<compile_context>
chip_gen: v5e
topology: v5e:2x2
jax: 0.10.0
libtpu: 0.0.40
codegen_flags: <defaults>
</compile_context>

<pallas_src>
import math
import functools

import jax
import jax.numpy as jnp
from jax.experimental import pallas as pl
from jax.experimental.pallas import tpu as pltpu


# ----------------------------- kernels --------------------------------------

def _pe_add_kernel(x_ref, pe_ref, o_ref, *, batch):
    # x_ref: (TS, B*E), pe_ref: (TS, E) -> replicate pe across batch and add.
    pe_rep = jnp.tile(pe_ref[...], (1, batch))                 # (TS, B*E)
    o_ref[...] = (x_ref[...] + pe_rep).astype(o_ref.dtype)


def _pe_add_dropout_kernel(x_ref, pe_ref, bits_ref, o_ref, *, batch, threshold, scale):
    # Training path: add PE, then inverted dropout with keep prob (1 - p).
    pe_rep = jnp.tile(pe_ref[...], (1, batch))                 # (TS, B*E)
    y = x_ref[...] + pe_rep
    keep = bits_ref[...] >= jnp.uint32(threshold)              # P(keep) = 1 - p
    o_ref[...] = jnp.where(keep, y * scale, jnp.zeros_like(y)).astype(o_ref.dtype)


# ----------------------------- tiling helper ---------------------------------

def _tile_rows(num_rows, row_bytes, target_bytes=2 << 20):
    """Sequence-tile height: ~2 MiB per x/out block (fits double-buffered in the
    scoped VMEM of v5e/v6e *and* v7x's smaller 64 MiB VMEM), multiple of 8."""
    if num_rows * row_bytes <= target_bytes:
        return int(num_rows)                       # single full-extent block
    ts = (target_bytes // row_bytes) // 8 * 8
    return int(max(8, min(ts, num_rows)))


# ----------------------------- module ---------------------------------------

class PositionalEncoding:
    """JAX/Pallas port of the PyTorch PositionalEncoding module."""

    def __init__(self, embed_channels: int, timesteps: int, dropout: float = 0.1):
        self.p = float(dropout)
        position = jnp.arange(timesteps, dtype=jnp.float32)[:, None]          # (T, 1)
        div_term = jnp.exp(
            jnp.arange(0, embed_channels, 2, dtype=jnp.float32)
            * (-math.log(10000.0) / embed_channels)
        )                                                                      # (E/2,)
        pe = jnp.zeros((timesteps, embed_channels), dtype=jnp.float32)
        pe = pe.at[:, 0::2].set(jnp.sin(position * div_term))
        pe = pe.at[:, 1::2].set(jnp.cos(position * div_term))
        self.pe = pe                                                           # (T, E)

    def __call__(self, x, *, training: bool = False, rng=None):
        # x: (S, B, E)
        S, B, E = x.shape
        BE = B * E
        x2d = x.reshape(S, BE)                         # zero-cost, lane-dense output
        pe2d = self.pe[:S].astype(x.dtype)             # (S, E), activation dtype

        TS = _tile_rows(S, BE * x.dtype.itemsize)
        grid = (pl.cdiv(S, TS),)

        x_spec = pl.BlockSpec((TS, BE), lambda i: (i, 0))
        pe_spec = pl.BlockSpec((TS, E), lambda i: (i, 0))
        o_spec = pl.BlockSpec((TS, BE), lambda i: (i, 0))
        out_shape = jax.ShapeDtypeStruct((S, BE), x.dtype)
        cparams = pltpu.CompilerParams(dimension_semantics=("parallel",))

        if not training or self.p == 0.0:
            out2d = pl.pallas_call(
                functools.partial(_pe_add_kernel, batch=B),
                out_shape=out_shape,
                grid=grid,
                in_specs=[x_spec, pe_spec],
                out_specs=o_spec,
                compiler_params=cparams,
            )(x2d, pe2d)
            return out2d.reshape(S, B, E)

        # Training path: random bits generated host-side (portable; works in
        # interpret mode and on TPU); masking + scaling happen in-kernel.
        # TODO(synk): on real TPU silicon, in-kernel pltpu.prng_seed(seed +
        #             pl.program_id(0)) + pltpu.prng_random_bits would avoid the
        #             extra HBM stream of the bits array.
        if rng is None:
            rng = jax.random.PRNGKey(0)
        bits = jax.random.bits(rng, (S, BE), dtype=jnp.uint32)
        threshold = min(int(round(self.p * 2.0 ** 32)), 2 ** 32 - 1)
        scale = 1.0 / (1.0 - self.p)

        out2d = pl.pallas_call(
            functools.partial(_pe_add_dropout_kernel, batch=B,
                              threshold=threshold, scale=scale),
            out_shape=out_shape,
            grid=grid,
            in_specs=[x_spec, pe_spec, x_spec],        # bits tiled like x
            out_specs=o_spec,
            compiler_params=cparams,
        )(x2d, pe2d, bits)
        return out2d.reshape(S, B, E)


# ----------------------------- demo / check ----------------------------------

if __name__ == "__main__":
    seq_len, batch, embed, timesteps = 8, 2, 64, 16     # B*E = 128 -> lane-dense

    key = jax.random.PRNGKey(0)
    kx, kdrop = jax.random.split(key)
    x = jax.random.normal(kx, (seq_len, batch, embed), dtype=jnp.float32)

    module = PositionalEncoding(embed_channels=embed, timesteps=timesteps, dropout=0.1)

    # Eval-mode forward (dropout == identity), hot path in the Pallas kernel.
    out = jax.block_until_ready(module(x, training=False))
    ref = x + module.pe[:seq_len][:, None, :]
    assert out.shape == (seq_len, batch, embed)
    assert jnp.allclose(out, ref, atol=1e-6), "eval-path mismatch vs reference"

    # Training-mode (in-kernel dropout masking) path.
    out_train = jax.block_until_ready(module(x, training=True, rng=kdrop))
    assert out_train.shape == (seq_len, batch, embed)
    # Inverted-dropout invariant: every element is either 0 or ref / (1 - p).
    scaled = ref / (1.0 - module.p)
    ok = jnp.isclose(out_train, 0.0, atol=1e-6) | jnp.isclose(out_train, scaled, atol=1e-5)
    assert bool(jnp.all(ok)), "training-path dropout invariant violated"

    print("KERNEL_OK")
</pallas_src>

<mosaic_0001>
module attributes {stable_mosaic.version = 11 : i64} {
  func.func @_pe_add_kernel(%arg0: i32, %arg1: memref<8x128xf32, #tpu.memory_space<vmem>>, %arg2: memref<8x64xf32, #tpu.memory_space<vmem>>, %arg3: memref<8x128xf32, #tpu.memory_space<vmem>>) attributes {dimension_semantics = [#tpu.dimension_semantics<parallel>], iteration_bounds = array<i64: 1>, scalar_prefetch = 0 : i64, scratch_operands = 0 : i64, tpu.core_type = #tpu.core_type<tc>, window_params = [{transform_indices = @transform_0, window_bounds = array<i64: 8, 128>}, {transform_indices = @transform_1, window_bounds = array<i64: 8, 64>}, {transform_indices = @transform_2, window_bounds = array<i64: 8, 128>}]} {
    %c0 = arith.constant 0 : index
    %c0_0 = arith.constant 0 : index
    %0 = vector.load %arg2[%c0, %c0_0] : memref<8x64xf32, #tpu.memory_space<vmem>>, vector<8x64xf32>
    %1 = tpu.concatenate %0, %0 in 1 : vector<8x64xf32>, vector<8x64xf32> -> vector<8x128xf32>
    %c0_1 = arith.constant 0 : index
    %c0_2 = arith.constant 0 : index
    %2 = vector.load %arg1[%c0_1, %c0_2] : memref<8x128xf32, #tpu.memory_space<vmem>>, vector<8x128xf32>
    %3 = arith.addf %2, %1 : vector<8x128xf32>
    %c0_3 = arith.constant 0 : index
    %c0_4 = arith.constant 0 : index
    %4 = vector.load %arg3[%c0_3, %c0_4] : memref<8x128xf32, #tpu.memory_space<vmem>>, vector<8x128xf32>
    tpu.vector_store %arg3[%c0_3, %c0_4], %3 {strides = array<i32>} : memref<8x128xf32, #tpu.memory_space<vmem>>, vector<8x128xf32>,
    return
  }
  func.func @transform_0(%arg0: i32) -> (i32, i32) {
    %c0_i32 = arith.constant 0 : i32
    %c0_i32_0 = arith.constant 0 : i32
    return %arg0, %c0_i32 : i32, i32
  }
  func.func @transform_1(%arg0: i32) -> (i32, i32) {
    %c0_i32 = arith.constant 0 : i32
    %c0_i32_0 = arith.constant 0 : i32
    return %arg0, %c0_i32 : i32, i32
  }
  func.func @transform_2(%arg0: i32) -> (i32, i32) {
    %c0_i32 = arith.constant 0 : i32
    %c0_i32_0 = arith.constant 0 : i32
    return %arg0, %c0_i32 : i32, i32
  }
}

</mosaic_0001>

<bundles_post_ra>
// kernel: tpu_custom_call.1
= control target key start
LH: loop header
LB: loop body
LE: loop exit
PB: predicated region body
PF: predicated region fallthrough
CT: control target
= control target key end

     0   :  { %7 = vsyncpa [#allocation3], 0  ;;  %s178_s0 = inlined_call_operand.hbm [shape: f32[8,128], index: 0, kind: input, shape index: {}]   ;;  %s179_s1 = inlined_call_operand.hbm [shape: f32[8,64], index: 1, kind: input, shape index: {}]   ;;  %s180_s2 = inlined_call_operand.hbm [shape: f32[8,128], index: 2, kind: output, shape index: {}]  }
   0x1   :  { %8 = vsyncpa [#allocation6], 0 }
   0x2   :  { %9 = vsyncpa [#allocation4], 0  ;;  %s15_s11 = sshll.u32 %s178_s0, 4  ;;  %s150_s12 = smov [#allocation2]   ;;  %s16_s11 = int_to_ptr.hbm [resolvable:$true] %s15_s11 }
   0x3   :  { %s17_s13 = sshll.u32 %s150_s12, 4  ;;  %s26_s16 = sshll.u32 %s179_s1, 4  ;;  %s18_s13 = int_to_ptr.vmem [resolvable:$true] %s17_s13  ;;  %s27_s16 = int_to_ptr.hbm [resolvable:$true] %s26_s16 }
   0x4   :  { %20 = dma.hbm_to_vmem [thread:$0]  %s16_s11, 128, %s18_s13, [#allocation3]  }
   0x5   :  { %s151_s17 = smov [#allocation5]  }
   0x6   :  { %s28_s18 = sshll.u32 %s151_s17, 4  ;;  %s29_s18 = int_to_ptr.vmem [resolvable:$true] %s28_s18 }
   0x7   :  { %31 = dma.hbm_to_vmem [thread:$0]  %s27_s16, 128, %s29_s18, [#allocation6]  }
   0x8   :  { %144 = dma.done.wait [#allocation3], 128  }
   0x9   :  { %145 = vsyncadd [#allocation3], 4294967168 }
   0xa   :  { %146 = dma.done.wait [#allocation6], 128  }
   0xb   :  { %147 = vsyncadd [#allocation6], 4294967168  ;;  %v40_v0 = vld [vmem:[#allocation5] sm:$0xff]  ;;  %s152_s0 = smov 64   ;;  %vm45_vm0 = vcmask 523264   ;;  %v47_v1 = vld [vmem:[#allocation2] sm:$0xff] }
   0xc   :  { %42 = vrot.lane.b32.xlu0 %v40_v0, %s152_s0  ;;  %s153_s19 = smov [#allocation7]   ;;  %s57_s1 = sshll.u32 %s180_s2, 4  ;;  %s58_s1 = int_to_ptr.hbm [resolvable:$true] %s57_s1 }
   0xd   :  { %s55_s20 = sshll.u32 %s153_s19, 4  ;;  %s56_s20 = int_to_ptr.vmem [resolvable:$true] %s55_s20 }
  0x7e   :  { %v43_v2 = vpop.permute.xlu0 %42 }
  0x7f   :  { %v46_v3 = vsel %vm45_vm0, %v40_v0, %v43_v2 }
  0x80   :  { %v48_v4 = vadd.f32 %v47_v1, %v46_v3 }
  0x82   :  { %49 = vst [vmem:[#allocation7] sm:$0xff] %v48_v4 }
  0x83   :  { %60 = dma.vmem_to_hbm [thread:$0]  %s56_s20, 128, %s58_s1, [#allocation4]  }
  0x84   :  { %148 = dma.done.wait [#allocation4], 128  }
  0x85   :  { %149 = vsyncadd [#allocation4], 4294967168 }
  0x86   :  { %65 = vsyncpa [#allocation3], 1 }
  0x87   :  { %66 = vsyncpa [#allocation6], 1 }
  0x88   :  { %67 = vsyncpa [#allocation4], 1 }

</bundles_post_ra>
